<compile_context>
chip_gen: v7x
topology: tpu7x:2x2x1
jax: 0.10.0
libtpu: 0.0.40
codegen_flags: <defaults>
</compile_context>

<pallas_src>
import jax
import jax.numpy as jnp
from jax.experimental import pallas as pl
from jax.experimental.pallas import tpu as pltpu

CLIP_MEAN = (0.48145466, 0.4578275, 0.40821073)
CLIP_STD = (0.26862954, 0.26130258, 0.27577711)

LANE = 128  # TPU lane width


def _round_up(a, b):
    return -(-a // b) * b


def _device_caps():
    """Per-generation (F-tile cap, vmem_limit_bytes)."""
    try:
        kind = jax.devices()[0].device_kind.lower()
    except Exception:  # pragma: no cover
        kind = ""
    if "v6" in kind:                     # v6e: 128 MiB physical VMEM
        return 8192, 96 * 1024 * 1024
    if "v7" in kind or "tpu7" in kind:   # v7x: 64 MiB physical per TC
        return 4096, 48 * 1024 * 1024
    if "v5 lite" in kind or "v5e" in kind:
        return 2048, 32 * 1024 * 1024
    # unknown / older chips: conservative defaults
    return 2048, 32 * 1024 * 1024


def _pick_f_tile(F, stream_width, Kp, batch_hint, tf_cap, vmem_limit_bytes):
    """Largest F tile that fits the double-buffered streams in the VMEM budget."""
    budget = int(vmem_limit_bytes * 0.75)  # ~25% headroom under the scoped limit
    # static (non-F-scaling) VMEM: head / bias / out (double-buffered) + feat acc
    static = 2 * (stream_width * Kp * 2 + Kp * 4 + batch_hint * Kp * 4) \
        + batch_hint * stream_width * 4
    # per unit of tF: double-buffered bf16 weight tile + double-buffered bf16 x slab
    per_f = 2 * (stream_width * 2) + 2 * (batch_hint * 2)
    tf_budget = max(512, (budget - static) // per_f)
    tf = min(tf_cap, tf_budget, _round_up(F, 512))
    tf = max(512, (tf // 512) * 512)
    return int(tf)


# ---------------------------------------------------------------------------
# Kernels
# ---------------------------------------------------------------------------
def pcbm_fused_kernel(x_ref, w_enc_ref, head_ref, b_ref, out_ref, feat_acc):
    # x_ref:     [B, tF]      bf16 pixel slab (flattened NCHW, zero-padded to F_pad)
    # w_enc_ref: [tF, Dp]     bf16 encoder weight tile (Normalize pre-folded)
    # head_ref:  [Dp, Kp]     bf16 fused concept-projection + linear head
    # b_ref:     [1, Kp]      fp32 fully-folded logits bias
    # out_ref:   [B, Kp]      fp32 logits (resident across the reduction axis)
    # feat_acc:  [B, Dp]      fp32 VMEM accumulator for image features
    k = pl.program_id(0)

    @pl.when(k == 0)
    def _():
        feat_acc[...] = jnp.zeros_like(feat_acc)

    feat_acc[...] += jnp.dot(x_ref[...], w_enc_ref[...],
                             preferred_element_type=jnp.float32)

    @pl.when(k == pl.num_programs(0) - 1)
    def _():
        out_ref[...] = jnp.dot(feat_acc[...].astype(jnp.bfloat16), head_ref[...],
                               preferred_element_type=jnp.float32) + b_ref[...]


def pcbm_fullfold_kernel(x_ref, w_full_ref, b_ref, out_ref, acc):
    # Single-matmul path (linear encoder folded all the way to the logits).
    # x_ref: [B, tF] bf16, w_full_ref: [tF, Kp] bf16, b_ref: [1, Kp] fp32.
    k = pl.program_id(0)

    @pl.when(k == 0)
    def _():
        acc[...] = jnp.zeros_like(acc)

    acc[...] += jnp.dot(x_ref[...], w_full_ref[...],
                        preferred_element_type=jnp.float32)

    @pl.when(k == pl.num_programs(0) - 1)
    def _():
        out_ref[...] = acc[...] + b_ref[...]


# ---------------------------------------------------------------------------
# One-time parameter folding (exact algebra, done once outside the hot path).
# ---------------------------------------------------------------------------
def fold_params(params, image_hw, *, weight_dtype=jnp.bfloat16,
                batch_hint=128, f_tile=None, allow_full_fold=True):
    H, W = image_hw
    hw = H * W

    w_enc = params["w_enc"].astype(jnp.float32)      # [F, D]
    b_enc = params["b_enc"].astype(jnp.float32)      # [D]
    cpt = params["concepts"].astype(jnp.float32)     # [Nc, D]
    w_cls = params["w_cls"].astype(jnp.float32)      # [K, Nc]
    b_cls = params["b_cls"].astype(jnp.float32)      # [K]
    F, D = w_enc.shape
    K = w_cls.shape[0]

    mean = jnp.repeat(jnp.asarray(CLIP_MEAN, jnp.float32), hw)          # [F]
    inv_std = 1.0 / jnp.repeat(jnp.asarray(CLIP_STD, jnp.float32), hw)  # [F]

    # 1. Fold CLIP Normalize into the (synthetic linear) encoder.
    w_enc_fold = w_enc * inv_std[:, None]                               # [F, D]
    b_enc_fold = b_enc - (mean * inv_std) @ w_enc                       # [D]

    # 2. Fold concept projection + linear head into a single [D, K] matrix.
    w_head = cpt.T @ w_cls.T                                            # [D, K]

    # 3. Fold the encoder bias straight into the logits bias.
    b_logits = b_enc_fold @ w_head + b_cls                              # [K]

    # 4. Lane-pad K and D to multiples of 128 (lane-dense tiles, unmasked vst).
    Kp = _round_up(K, LANE)
    Dp = _round_up(D, LANE)
    w_head_p = jnp.zeros((Dp, Kp), jnp.float32).at[:D, :K].set(w_head)
    b_logits_p = jnp.zeros((1, Kp), jnp.float32).at[0, :K].set(b_logits)
    w_enc_p = jnp.zeros((F, Dp), jnp.float32).at[:, :D].set(w_enc_fold)

    # 5. Optionally fold encoder @ head into one matrix (linear encoder only,
    #    and only when it shrinks the streamed weight bytes, i.e. Dp > Kp).
    full_fold = bool(allow_full_fold and Dp > Kp)

    tf_cap, vmem_limit = _device_caps()
    stream_width = Kp if full_fold else Dp
    if f_tile is None:
        f_tile = _pick_f_tile(F, stream_width, Kp, batch_hint, tf_cap, vmem_limit)
    F_pad = _round_up(F, f_tile)

    folded = {
        "mode": "full_fold" if full_fold else "fused",
        "b_logits": b_logits_p,                       # [1, Kp] fp32
        "f_tile": int(f_tile),
        "vmem_limit_bytes": int(vmem_limit),
        "n_feat": F,
        "n_classes": K,
    }
    if full_fold:
        w_full = w_enc_p @ w_head_p                                      # [F, Kp]
        if F_pad != F:
            w_full = jnp.pad(w_full, ((0, F_pad - F), (0, 0)))
        folded["w_full"] = w_full.astype(weight_dtype)                   # [F_pad, Kp]
    else:
        if F_pad != F:
            w_enc_p = jnp.pad(w_enc_p, ((0, F_pad - F), (0, 0)))
        folded["w_enc"] = w_enc_p.astype(weight_dtype)                   # [F_pad, Dp]
        folded["w_head"] = w_head_p.astype(weight_dtype)                 # [Dp, Kp]
    return folded


# ---------------------------------------------------------------------------
# Wrapper: flatten NCHW, pad the reduction axis, launch the fused kernel.
# ---------------------------------------------------------------------------
def model_wrapper_forward(images, folded):
    """images: [B, 3, H, W] fp32 (NCHW). Returns logits [B, K]."""
    B, C, H, W = images.shape
    F = C * H * W
    assert F == folded["n_feat"], "image resolution does not match folded params"
    # TODO(synk): Resize/CenterCrop assumed identity (see header).

    tF = folded["f_tile"]
    K = folded["n_classes"]
    b_logits = folded["b_logits"]
    Kp = b_logits.shape[1]

    # bf16 activation stream (halves the x HBM bytes; weights are bf16 anyway).
    x = images.reshape(B, F).astype(jnp.bfloat16)

    cparams = pltpu.CompilerParams(
        dimension_semantics=("arbitrary",),            # F is a reduction axis
        vmem_limit_bytes=folded["vmem_limit_bytes"])

    if folded["mode"] == "full_fold":
        w_full = folded["w_full"]
        F_pad = w_full.shape[0]
        if F_pad != F:
            x = jnp.pad(x, ((0, 0), (0, F_pad - F)))
        grid = (F_pad // tF,)
        cost = pl.CostEstimate(
            flops=2 * B * F_pad * Kp, transcendentals=0,
            bytes_accessed=int(B * F_pad * 2 + F_pad * Kp * 2
                               + Kp * 4 + B * Kp * 4))
        out = pl.pallas_call(
            pcbm_fullfold_kernel,
            grid=grid,
            in_specs=[
                pl.BlockSpec((B, tF), lambda k: (0, k)),    # x slab over F
                pl.BlockSpec((tF, Kp), lambda k: (k, 0)),   # fully-folded weight tile
                pl.BlockSpec((1, Kp), lambda k: (0, 0)),    # logits bias
            ],
            out_specs=pl.BlockSpec((B, Kp), lambda k: (0, 0)),
            out_shape=jax.ShapeDtypeStruct((B, Kp), jnp.float32),
            scratch_shapes=[pltpu.VMEM((B, Kp), jnp.float32)],
            compiler_params=cparams,
            cost_estimate=cost,
        )(x, w_full, b_logits)
    else:
        w_enc = folded["w_enc"]
        w_head = folded["w_head"]
        F_pad, Dp = w_enc.shape
        if F_pad != F:
            x = jnp.pad(x, ((0, 0), (0, F_pad - F)))
        grid = (F_pad // tF,)
        cost = pl.CostEstimate(
            flops=2 * B * F_pad * Dp + 2 * B * Dp * Kp, transcendentals=0,
            bytes_accessed=int(B * F_pad * 2 + F_pad * Dp * 2 + Dp * Kp * 2
                               + Kp * 4 + B * Kp * 4))
        out = pl.pallas_call(
            pcbm_fused_kernel,
            grid=grid,
            in_specs=[
                pl.BlockSpec((B, tF), lambda k: (0, k)),    # x slab over F
                pl.BlockSpec((tF, Dp), lambda k: (k, 0)),   # encoder weight tile
                pl.BlockSpec((Dp, Kp), lambda k: (0, 0)),   # fused head
                pl.BlockSpec((1, Kp), lambda k: (0, 0)),    # logits bias
            ],
            out_specs=pl.BlockSpec((B, Kp), lambda k: (0, 0)),
            out_shape=jax.ShapeDtypeStruct((B, Kp), jnp.float32),
            scratch_shapes=[pltpu.VMEM((B, Dp), jnp.float32)],
            compiler_params=cparams,
            cost_estimate=cost,
        )(x, w_enc, w_head, b_logits)

    return out[:, :K]


def init_params(key, feat_in, embed_dim, n_concepts, n_classes):
    k1, k2, k3, k4, k5 = jax.random.split(key, 5)
    return {
        "w_enc": jax.random.normal(k1, (feat_in, embed_dim), jnp.float32) * 0.02,
        "b_enc": jax.random.normal(k2, (embed_dim,), jnp.float32) * 0.01,
        "concepts": jax.random.normal(k3, (n_concepts, embed_dim), jnp.float32) * 0.1,
        "w_cls": jax.random.normal(k4, (n_classes, n_concepts), jnp.float32) * 0.1,
        "b_cls": jax.random.normal(k5, (n_classes,), jnp.float32) * 0.01,
    }


# ---------------------------------------------------------------------------
# References
# ---------------------------------------------------------------------------
def _reference_fp32(images, params):
    """Original module algebra, full fp32 (loose vs bf16 kernel)."""
    B, _, H, W = images.shape
    x = images.reshape(B, -1)
    mean = jnp.repeat(jnp.asarray(CLIP_MEAN, jnp.float32), H * W)
    std = jnp.repeat(jnp.asarray(CLIP_STD, jnp.float32), H * W)
    xn = (x - mean) / std
    feat = xn @ params["w_enc"] + params["b_enc"]
    return (feat @ params["concepts"].T) @ params["w_cls"].T + params["b_cls"]


def _reference_folded(images, folded):
    """Same folded / bf16 algebra as the kernel (tight check)."""
    B = images.shape[0]
    F = folded["n_feat"]
    K = folded["n_classes"]
    x = images.reshape(B, F).astype(jnp.bfloat16).astype(jnp.float32)
    if folded["mode"] == "full_fold":
        w = folded["w_full"].astype(jnp.float32)
        F_pad = w.shape[0]
        xp = jnp.pad(x, ((0, 0), (0, F_pad - F)))
        logits = xp @ w + folded["b_logits"]
    else:
        w_enc = folded["w_enc"].astype(jnp.float32)
        F_pad = w_enc.shape[0]
        xp = jnp.pad(x, ((0, 0), (0, F_pad - F)))
        feat = xp @ w_enc
        logits = (feat.astype(jnp.bfloat16).astype(jnp.float32)
                  @ folded["w_head"].astype(jnp.float32)) + folded["b_logits"]
    return logits[:, :K]


if __name__ == "__main__":
    # small synthetic shapes consistent with the forward pass
    B, C, H, W = 2, 3, 16, 16          # "resolution" = 16 (synthetic)
    key = jax.random.PRNGKey(0)
    k_img, k_par1, k_par2 = jax.random.split(key, 3)
    images = jax.random.uniform(k_img, (B, C, H, W), jnp.float32)  # NCHW in [0,1]

    # --- case 1: fused two-matmul path (D_pad == K_pad -> no full fold) ------
    D1, Nc1, K1 = 64, 32, 8
    params1 = init_params(k_par1, C * H * W, D1, Nc1, K1)
    folded1 = fold_params(params1, (H, W), batch_hint=B)
    assert folded1["mode"] == "fused"
    out1 = model_wrapper_forward(images, folded1)
    jax.block_until_ready(out1)
    assert jnp.allclose(out1, _reference_folded(images, folded1),
                        atol=2e-3, rtol=2e-3), "case1: mismatch vs folded reference"
    assert jnp.allclose(out1, _reference_fp32(images, params1),
                        atol=5e-2, rtol=5e-2), "case1: mismatch vs fp32 reference"

    # --- case 2: same params, forced small F tile -> multi-step reduction ----
    folded2 = fold_params(params1, (H, W), batch_hint=B, f_tile=256)
    out2 = model_wrapper_forward(images, folded2)
    jax.block_until_ready(out2)
    assert jnp.allclose(out2, _reference_folded(images, folded2),
                        atol=2e-3, rtol=2e-3), "case2: mismatch vs folded reference"

    # --- case 3: full-fold single-matmul path (linear encoder, D_pad > K_pad)
    D3, Nc3, K3 = 256, 32, 8
    params3 = init_params(k_par2, C * H * W, D3, Nc3, K3)
    folded3 = fold_params(params3, (H, W), batch_hint=B)
    assert folded3["mode"] == "full_fold"
    out3 = model_wrapper_forward(images, folded3)
    jax.block_until_ready(out3)
    assert jnp.allclose(out3, _reference_folded(images, folded3),
                        atol=2e-3, rtol=2e-3), "case3: mismatch vs folded reference"
    assert jnp.allclose(out3, _reference_fp32(images, params3),
                        atol=5e-2, rtol=5e-2), "case3: mismatch vs fp32 reference"

    print("KERNEL_OK")
</pallas_src>

<mosaic_0001>
module attributes {stable_mosaic.version = 11 : i64} {
  func.func @pcbm_fused_kernel(%arg0: i32, %arg1: memref<2x1024xbf16, #tpu.memory_space<vmem>>, %arg2: memref<1024x128xbf16, #tpu.memory_space<vmem>>, %arg3: memref<128x128xbf16, #tpu.memory_space<vmem>>, %arg4: memref<1x128xf32, #tpu.memory_space<vmem>>, %arg5: memref<2x128xf32, #tpu.memory_space<vmem>>, %arg6: memref<2x128xf32, #tpu.memory_space<vmem>>) attributes {dimension_semantics = [#tpu.dimension_semantics<arbitrary>], iteration_bounds = array<i64: 1>, scalar_prefetch = 0 : i64, scratch_operands = 1 : i64, tpu.core_type = #tpu.core_type<tc>, window_params = [{transform_indices = @transform_0, window_bounds = array<i64: 2, 1024>}, {transform_indices = @transform_1, window_bounds = array<i64: 1024, 128>}, {pipeline_mode = #tpu.pipeline_mode<synchronous>, transform_indices = @transform_2, window_bounds = array<i64: 128, 128>}, {pipeline_mode = #tpu.pipeline_mode<synchronous>, transform_indices = @transform_3, window_bounds = array<i64: 1, 128>}, {pipeline_mode = #tpu.pipeline_mode<synchronous>, transform_indices = @transform_4, window_bounds = array<i64: 2, 128>}]} {
    %c0_i32 = arith.constant 0 : i32
    %0 = arith.cmpi eq, %arg0, %c0_i32 : i32
    %1 = arith.extui %0 : i1 to i32
    %c0_i32_0 = arith.constant 0 : i32
    %2 = arith.cmpi ne, %1, %c0_i32_0 : i32
    scf.if %2 {
      %cst_10 = arith.constant 0.000000e+00 : f32
      %12 = vector.broadcast %cst_10 : f32 to vector<2x128xf32>
      %c0_11 = arith.constant 0 : index
      %c0_12 = arith.constant 0 : index
      %13 = vector.load %arg6[%c0_11, %c0_12] : memref<2x128xf32, #tpu.memory_space<vmem>>, vector<2x128xf32>
      tpu.vector_store %arg6[%c0_11, %c0_12], %12 {strides = array<i32>} : memref<2x128xf32, #tpu.memory_space<vmem>>, vector<2x128xf32>,
    } else {
    }
    %c0 = arith.constant 0 : index
    %c0_1 = arith.constant 0 : index
    %3 = vector.load %arg6[%c0, %c0_1] : memref<2x128xf32, #tpu.memory_space<vmem>>, vector<2x128xf32>
    %c0_2 = arith.constant 0 : index
    %c0_3 = arith.constant 0 : index
    %4 = vector.load %arg1[%c0_2, %c0_3] : memref<2x1024xbf16, #tpu.memory_space<vmem>>, vector<2x1024xbf16>
    %c0_4 = arith.constant 0 : index
    %c0_5 = arith.constant 0 : index
    %5 = vector.load %arg2[%c0_4, %c0_5] : memref<1024x128xbf16, #tpu.memory_space<vmem>>, vector<1024x128xbf16>
    %cst = arith.constant dense<0.000000e+00> : vector<2x128xf32>
    %6 = tpu.matmul %4, %5, %cst {dimension_numbers = #tpu.dot_dimension_numbers<[1], [0], [0], [1], [0, 0, 1, 1], [], []>} : vector<2x1024xbf16>, vector<1024x128xbf16>, vector<2x128xf32> -> vector<2x128xf32>
    %7 = arith.addf %3, %6 : vector<2x128xf32>
    %c0_6 = arith.constant 0 : index
    %c0_7 = arith.constant 0 : index
    %8 = vector.load %arg6[%c0_6, %c0_7] : memref<2x128xf32, #tpu.memory_space<vmem>>, vector<2x128xf32>
    tpu.vector_store %arg6[%c0_6, %c0_7], %7 {strides = array<i32>} : memref<2x128xf32, #tpu.memory_space<vmem>>, vector<2x128xf32>,
    %c0_i32_8 = arith.constant 0 : i32
    %9 = arith.cmpi eq, %arg0, %c0_i32_8 : i32
    %10 = arith.extui %9 : i1 to i32
    %c0_i32_9 = arith.constant 0 : i32
    %11 = arith.cmpi ne, %10, %c0_i32_9 : i32
    scf.if %11 {
      %c0_10 = arith.constant 0 : index
      %c0_11 = arith.constant 0 : index
      %12 = vector.load %arg6[%c0_10, %c0_11] : memref<2x128xf32, #tpu.memory_space<vmem>>, vector<2x128xf32>
      %13 = arith.truncf %12 : vector<2x128xf32> to vector<2x128xbf16>
      %c0_12 = arith.constant 0 : index
      %c0_13 = arith.constant 0 : index
      %14 = vector.load %arg3[%c0_12, %c0_13] : memref<128x128xbf16, #tpu.memory_space<vmem>>, vector<128x128xbf16>
      %cst_14 = arith.constant dense<0.000000e+00> : vector<2x128xf32>
      %15 = tpu.matmul %13, %14, %cst_14 {dimension_numbers = #tpu.dot_dimension_numbers<[1], [0], [0], [1], [0, 0, 1, 1], [], []>} : vector<2x128xbf16>, vector<128x128xbf16>, vector<2x128xf32> -> vector<2x128xf32>
      %c0_15 = arith.constant 0 : index
      %c0_16 = arith.constant 0 : index
      %16 = vector.load %arg4[%c0_15, %c0_16] : memref<1x128xf32, #tpu.memory_space<vmem>>, vector<1x128xf32>
      %17 = vector.broadcast %16 : vector<1x128xf32> to vector<2x128xf32>
      %18 = arith.addf %15, %17 : vector<2x128xf32>
      %c0_17 = arith.constant 0 : index
      %c0_18 = arith.constant 0 : index
      %19 = vector.load %arg5[%c0_17, %c0_18] : memref<2x128xf32, #tpu.memory_space<vmem>>, vector<2x128xf32>
      tpu.vector_store %arg5[%c0_17, %c0_18], %18 {strides = array<i32>} : memref<2x128xf32, #tpu.memory_space<vmem>>, vector<2x128xf32>,
    } else {
    }
    return
  }
  func.func @transform_0(%arg0: i32) -> (i32, i32) {
    %c0_i32 = arith.constant 0 : i32
    %c0_i32_0 = arith.constant 0 : i32
    return %c0_i32, %arg0 : i32, i32
  }
  func.func @transform_1(%arg0: i32) -> (i32, i32) {
    %c0_i32 = arith.constant 0 : i32
    %c0_i32_0 = arith.constant 0 : i32
    return %arg0, %c0_i32 : i32, i32
  }
  func.func @transform_2(%arg0: i32) -> (i32, i32) {
    %c0_i32 = arith.constant 0 : i32
    %c0_i32_0 = arith.constant 0 : i32
    %c0_i32_1 = arith.constant 0 : i32
    return %c0_i32, %c0_i32_0 : i32, i32
  }
  func.func @transform_3(%arg0: i32) -> (i32, i32) {
    %c0_i32 = arith.constant 0 : i32
    %c0_i32_0 = arith.constant 0 : i32
    %c0_i32_1 = arith.constant 0 : i32
    return %c0_i32, %c0_i32_0 : i32, i32
  }
  func.func @transform_4(%arg0: i32) -> (i32, i32) {
    %c0_i32 = arith.constant 0 : i32
    %c0_i32_0 = arith.constant 0 : i32
    %c0_i32_1 = arith.constant 0 : i32
    return %c0_i32, %c0_i32_0 : i32, i32
  }
}

</mosaic_0001>

<bundles_post_ra>
// kernel: tpu_custom_call.1
= control target key start
LH: loop header
LB: loop body
LE: loop exit
PB: predicated region body
PF: predicated region fallthrough
CT: control target
= control target key end

     0   :  { %9 = vsyncpa [#allocation4], 0  ;;  %s1400_s0 = inlined_call_operand.hbm [shape: bf16[2,1024], index: 0, kind: input, shape index: {}]   ;;  %s1401_s1 = inlined_call_operand.hbm [shape: bf16[1024,128], index: 1, kind: input, shape index: {}]   ;;  %s1402_s2 = inlined_call_operand.hbm [shape: bf16[128,128], index: 2, kind: input, shape index: {}]   ;;  %s1403_s3 = inlined_call_operand.vmem [shape: f32[1,128], index: 3, kind: input, shape index: {}]   ;;  %s1404_s4 = inlined_call_operand.hbm [shape: f32[2,128], index: 4, kind: output, shape index: {}]  }
   0x1   :  { %10 = vsyncpa [#allocation7], 0 }
   0x2   :  { %11 = vsyncpa [#allocation5], 0  ;;  %s1296_s15 = smov [#allocation6]   ;;  %s1202_s19 = scalar_lea.hbm %s1401_s1, 8192 }
   0x3   :  { %s27_s16 = sshll.u32 %s1296_s15, 4  ;;  %p1203_p0 = scmp.ne.s32.totalorder %s1401_s1, %s1202_s19  ;;  %s28_s16 = int_to_ptr.vmem [resolvable:$true] %s27_s16 }
   0x4   :  { %p1206_p1 = scmp.lt.u32.totalorder %s1202_s19, %s1401_s1 }
   0x6   :  { %p1208_p2 = pnand %p1206_p1, %p1203_p0 }
   0x8   :  { %1211 = shalt.err (!%p1208_p2)
}
   0x9   :  { %s1212_s24 = scalar_lea.vmem %s28_s16, 8192  ;;  %p1217_p4 = scmp.lt.s32.totalorder %s28_s16, %s28_s16 }
   0xa   :  { %p1213_p3 = scmp.ne.s32.totalorder %s28_s16, %s1212_s24  ;;  %p1218_p5 = scmp.lt.s32.totalorder %s1212_s24, %s1212_s24 }
   0xc   :  { %p1219_p6 = por %p1218_p5, %p1217_p4 }
   0xe   :  { %p1220_p7 = pnand %p1219_p6, %p1213_p3 }
  0x10   :  { %1223 = shalt.err (!%p1220_p7)
}
  0x11   :  { %s1297_s25 = smov 64   ;;  %s1298_s26 = smov 4  }
  0x12   :  { %33 = dma.hbm_to_vmem [thread:$0]  %s1401_s1, 8192, %s28_s16, [#allocation7], %s1297_s25, %s1297_s25, %s1298_s26  }
  0x13   :  { %s1299_s29 = smov [#allocation3]   ;;  %s1300_s5 = smov [#allocation8]  }
  0x14   :  { %s18_s30 = sshll.u32 %s1299_s29, 4  ;;  %s39_s6 = sshll.u32 %s1300_s5, 4  ;;  %s19_s30 = int_to_ptr.vmem [resolvable:$true] %s18_s30  ;;  %s40_s6 = int_to_ptr.vmem [resolvable:$true] %s39_s6 }
  0x15   :  { %s1224_s9 = scalar_lea.hbm %s1400_s0, 128 }
  0x16   :  { %p1225_p8 = scmp.ne.s32.totalorder %s1400_s0, %s1224_s9  ;;  %p1228_p9 = scmp.lt.u32.totalorder %s1224_s9, %s1400_s0 }
  0x18   :  { %p1230_p10 = pnand %p1228_p9, %p1225_p8 }
  0x1a   :  { %1233 = shalt.err (!%p1230_p10)
}
  0x1b   :  { %s1234_s1 = scalar_lea.vmem %s19_s30, 128  ;;  %p1239_p12 = scmp.lt.s32.totalorder %s19_s30, %s19_s30 }
  0x1c   :  { %p1235_p11 = scmp.ne.s32.totalorder %s19_s30, %s1234_s1  ;;  %p1240_p13 = scmp.lt.s32.totalorder %s1234_s1, %s1234_s1 }
  0x1e   :  { %p1241_p0 = por %p1240_p13, %p1239_p12 }
  0x20   :  { %p1242_p1 = pnand %p1241_p0, %p1235_p11 }
  0x22   :  { %1245 = shalt.err (!%p1242_p1)
}
  0x23   :  { %21 = dma.hbm_to_vmem [thread:$0]  %s1400_s0, 128, %s19_s30, [#allocation4]  }
  0x24   :  { %s1246_s18 = scalar_lea.hbm %s1402_s2, 1024 }
  0x25   :  { %p1247_p2 = scmp.ne.s32.totalorder %s1402_s2, %s1246_s18  ;;  %p1250_p3 = scmp.lt.u32.totalorder %s1246_s18, %s1402_s2 }
  0x27   :  { %p1252_p4 = pnand %p1250_p3, %p1247_p2 }
  0x29   :  { %1255 = shalt.err (!%p1252_p4)
}
  0x2a   :  { %s1256_s23 = scalar_lea.vmem %s40_s6, 1024  ;;  %p1261_p6 = scmp.lt.s32.totalorder %s40_s6, %s40_s6 }
  0x2b   :  { %p1257_p5 = scmp.ne.s32.totalorder %s40_s6, %s1256_s23  ;;  %p1262_p7 = scmp.lt.s32.totalorder %s1256_s23, %s1256_s23 }
  0x2d   :  { %p1263_p8 = por %p1262_p7, %p1261_p6 }
  0x2f   :  { %p1264_p9 = pnand %p1263_p8, %p1257_p5 }
  0x31   :  { %1267 = shalt.err (!%p1264_p9)
}
  0x32   :  { %45 = dma.hbm_to_vmem [thread:$0]  %s1402_s2, 1024, %s40_s6, [#allocation7], %s1297_s25, %s1297_s25, %s1298_s26  }
  0x33   :  { %1290 = dma.done.wait [#allocation4], 128  }
  0x34   :  { %1291 = vsyncadd [#allocation4], 4294967168 }
  0x35   :  { %1292 = dma.done.wait [#allocation7], 9216  }
  0x36   :  { %1293 = vsyncadd [#allocation7], 4294958080  ;;  %v1129_v0 = vld [vmem:[#allocation6 + $0x40] sm:$0xff]   ;;  %v1133_v4 = vld [vmem:[#allocation6 + $0x48] sm:$0xff]   ;;  %v1301_v22 = vmov 1966171168   ;;  %v198_v24 = vlaneseq }
  0x37   :  { %v1130_v1 = vld [vmem:[#allocation6 + $0xc0] sm:$0xff]   ;;  %1003 = vmatprep.subr.bf16.mxu0 %v1129_v0  ;;  %v1134_v5 = vld [vmem:[#allocation6 + $0xc8] sm:$0xff]   ;;  %v1137_v8 = vld [vmem:[#allocation6 + $0x50] sm:$0xff]   ;;  %v196_v23 = vunpack.c.l.s4 %v1301_v22  ;;  %vm1303_vm0 = vmmov 0   ;;  %s1304_s26 = smov [#allocation9]  }
  0x38   :  { %v1131_v2 = vld [vmem:[#allocation6] sm:$0xff]   ;;  %1025 = vmatprep.subr.bf16.mxu1 %v1130_v1  ;;  %v1135_v6 = vld [vmem:[#allocation6 + $0x8] sm:$0xff]   ;;  %v1138_v9 = vld [vmem:[#allocation6 + $0xd0] sm:$0xff]   ;;  %v199_v30 = vshrl.u32 %v198_v24, 7  ;;  %s920_s27 = sshll.u32 %s1304_s26, 4  ;;  %s921_s27 = int_to_ptr.vmem [resolvable:$true] %s920_s27 }
  0x39   :  { %v1132_v3 = vld [vmem:[#allocation6 + $0x80] sm:$0xff]   ;;  %1004 = vmatpush3.bf16.msra.mxu0 %v1131_v2  ;;  %v1136_v7 = vld [vmem:[#allocation6 + $0x88] sm:$0xff]   ;;  %v1139_v10 = vld [vmem:[#allocation6 + $0x10] sm:$0xff]   ;;  %v197_v29 = vunpack.c.0.s8 %v196_v23  ;;  %s1268_s28 = scalar_lea.vmem %s921_s27, 32  ;;  %p1273_p11 = scmp.lt.s32.totalorder %s921_s27, %s921_s27 }
  0x3a   :  { %1026 = vmatpush3.bf16.msra.mxu1 %v1132_v3  ;;  %1005 = vmatprep.subr.bf16.mxu0 %v1133_v4  ;;  %v1140_v11 = vld [vmem:[#allocation6 + $0x90] sm:$0xff]   ;;  %v1141_v12 = vld [vmem:[#allocation6 + $0x58] sm:$0xff]   ;;  %v1145_v16 = vld [vmem:[#allocation6 + $0x60] sm:$0xff]   ;;  %p1269_p10 = scmp.ne.s32.totalorder %s921_s27, %s1268_s28  ;;  %p1274_p12 = scmp.lt.s32.totalorder %s1268_s28, %s1268_s28 }
  0x3b   :  { %1027 = vmatprep.subr.bf16.mxu1 %v1134_v5  ;;  %v1142_v13 = vld [vmem:[#allocation6 + $0xd8] sm:$0xff]   ;;  %v1146_v17 = vld [vmem:[#allocation6 + $0xe0] sm:$0xff]   ;;  %v1149_v20 = vld [vmem:[#allocation6 + $0x68] sm:$0xff]   ;;  %v1372_v35 = vsub.s32 %v197_v29, %v199_v30 }
  0x3c   :  { %v1143_v14 = vld [vmem:[#allocation6 + $0x18] sm:$0xff]   ;;  %v1147_v18 = vld [vmem:[#allocation6 + $0x20] sm:$0xff]   ;;  %v1150_v21 = vld [vmem:[#allocation6 + $0xe8] sm:$0xff]   ;;  %p1275_p13 = por %p1274_p12, %p1273_p11 }
  0x3d   :  { %1006 = vmatpush3.bf16.msra.mxu0 %v1135_v6  ;;  %v1144_v15 = vld [vmem:[#allocation6 + $0x98] sm:$0xff]   ;;  %v1148_v19 = vld [vmem:[#allocation6 + $0xa0] sm:$0xff]   ;;  %v1151_v25 = vld [vmem:[#allocation6 + $0x28] sm:$0xff]  }
  0x3e   :  { %1028 = vmatpush3.bf16.msra.mxu1 %v1136_v7  ;;  %1007 = vmatprep.subr.bf16.mxu0 %v1137_v8  ;;  %v1152_v26 = vld [vmem:[#allocation6 + $0xa8] sm:$0xff]   ;;  %v1153_v27 = vld [vmem:[#allocation6 + $0x70] sm:$0xff]   ;;  %v1157_v33 = vld [vmem:[#allocation6 + $0x78] sm:$0xff]   ;;  %p1276_p0 = pnand %p1275_p13, %p1269_p10 }
  0x3f   :  { %1029 = vmatprep.subr.bf16.mxu1 %v1138_v9  ;;  %v1154_v28 = vld [vmem:[#allocation6 + $0xf0] sm:$0xff]   ;;  %v1158_v34 = vld [vmem:[#allocation6 + $0xf8] sm:$0xff]   ;;  %v1162_v41 = vld [vmem:[#allocation6 + $0x140] sm:$0xff]  }
  0x40   :  { %v1155_v31 = vld [vmem:[#allocation6 + $0x30] sm:$0xff]   ;;  %v1159_v36 = vld [vmem:[#allocation6 + $0x38] sm:$0xff]   ;;  %v1163_v42 = vld [vmem:[#allocation6 + $0x1c0] sm:$0xff]  }
  0x41   :  { %1008 = vmatpush3.bf16.msra.mxu0 %v1139_v10  ;;  %v1156_v32 = vld [vmem:[#allocation6 + $0xb0] sm:$0xff]   ;;  %v1160_v37 = vld [vmem:[#allocation6 + $0xb8] sm:$0xff]   ;;  %v1164_v46 = vld [vmem:[#allocation6 + $0x100] sm:$0xff]  }
  0x42   :  { %1030 = vmatpush3.bf16.msra.mxu1 %v1140_v11  ;;  %1009 = vmatprep.subr.bf16.mxu0 %v1141_v12  ;;  %v64_v38 = vld [vmem:[#allocation3] sm:$0xff]  ;;  %v1165_v48 = vld [vmem:[#allocation6 + $0x180] sm:$0xff]   ;;  %v1166_v51 = vld [vmem:[#allocation6 + $0x148] sm:$0xff]  }
  0x43   :  { %1031 = vmatprep.subr.bf16.mxu1 %v1142_v13  ;;  %v194_v39 = vcombine.high %v64_v38, %v64_v38  ;;  %v201_v40 = vrot.slane %v64_v38, %v1372_v35  ;;  %v1167_v53 = vld [vmem:[#allocation6 + $0x1c8] sm:$0xff]   ;;  %v1170_v58 = vld [vmem:[#allocation6 + $0x150] sm:$0xff]   ;;  %v1174_v62 = vld [vmem:[#allocation6 + $0x158] sm:$0xff]  }
  0x44   :  { %v1168_v55 = vld [vmem:[#allocation6 + $0x108] sm:$0xff]   ;;  %v1171_v59 = vld [vmem:[#allocation6 + $0x1d0] sm:$0xff]   ;;  %v1175_v63 = vld [vmem:[#allocation6 + $0x1d8] sm:$0xff]  }
  0x45   :  { %1010 = vmatpush3.bf16.msra.mxu0 %v1143_v14  ;;  %v209_v43 = vcombine.high %v201_v40, %v201_v40  ;;  %v217_v44 = vrot.slane %v201_v40, %v1372_v35  ;;  %v1377_v45 = vrot.slane %v194_v39, %v1372_v35  ;;  %v1169_v56 = vld [vmem:[#allocation6 + $0x188] sm:$0xff]   ;;  %v1172_v60 = vld [vmem:[#allocation6 + $0x110] sm:$0xff]   ;;  %v1176_v0 = vld [vmem:[#allocation6 + $0x118] sm:$0xff]  }
  0x46   :  { %1032 = vmatpush3.bf16.msra.mxu1 %v1144_v15  ;;  %1011 = vmatprep.subr.bf16.mxu0 %v1145_v16  ;;  %v1173_v61 = vld [vmem:[#allocation6 + $0x190] sm:$0xff]   ;;  %v1177_v1 = vld [vmem:[#allocation6 + $0x198] sm:$0xff]   ;;  %v1178_v2 = vld [vmem:[#allocation6 + $0x160] sm:$0xff]  }
  0x47   :  { %1033 = vmatprep.subr.bf16.mxu1 %v1146_v17  ;;  %v231_v47 = vrot.slane %v209_v43, %v1372_v35  ;;  %v210_v49 = vcombine.high %v1377_v45, %v1377_v45  ;;  %v239_v50 = vcombine.high %v217_v44, %v217_v44  ;;  %v1179_v3 = vld [vmem:[#allocation6 + $0x1e0] sm:$0xff]   ;;  %v1182_v6 = vld [vmem:[#allocation6 + $0x168] sm:$0xff]   ;;  %v1186_v10 = vld [vmem:[#allocation6 + $0x170] sm:$0xff]  }
  0x48   :  { %v1180_v4 = vld [vmem:[#allocation6 + $0x120] sm:$0xff]   ;;  %v1183_v7 = vld [vmem:[#allocation6 + $0x1e8] sm:$0xff]   ;;  %v1187_v11 = vld [vmem:[#allocation6 + $0x1f0] sm:$0xff]  }
  0x49   :  { %1012 = vmatpush3.bf16.msra.mxu0 %v1147_v18  ;;  %667 = vmatprep.mubr.bf16.mxu0 %v231_v47  ;;  %v241_v52 = vcombine.high %v231_v47, %v231_v47  ;;  %v238_v54 = vrot.slane %v210_v49, %v1372_v35  ;;  %v1181_v5 = vld [vmem:[#allocation6 + $0x1a0] sm:$0xff]   ;;  %v1184_v8 = vld [vmem:[#allocation6 + $0x128] sm:$0xff]   ;;  %v1188_v12 = vld [vmem:[#allocation6 + $0x130] sm:$0xff]   ;;  %v224_v18 = vrot.slane %v1377_v45, %v1372_v35 }
  0x4a   :  { %1034 = vmatpush3.bf16.msra.mxu1 %v1148_v19  ;;  %1013 = vmatprep.subr.bf16.mxu0 %v1149_v20  ;;  %v1185_v9 = vld [vmem:[#allocation6 + $0x1a8] sm:$0xff]   ;;  %v1189_v13 = vld [vmem:[#allocation6 + $0x1b0] sm:$0xff]   ;;  %v1190_v14 = vld [vmem:[#allocation6 + $0x178] sm:$0xff]  }
  0x4b   :  { %1035 = vmatprep.subr.bf16.mxu1 %v1150_v21  ;;  %707 = vmatprep.mubr.bf16.mxu1 %v241_v52  ;;  %v242_v57 = vcombine.high %v238_v54, %v238_v54  ;;  %v1191_v15 = vld [vmem:[#allocation6 + $0x1f8] sm:$0xff]   ;;  %v240_v19 = vcombine.high %v224_v18, %v224_v18  ;;  %v1194_v20 = vld [vmem:[#allocation8] sm:$0xff]   ;;  %v1302_v21 = vmov 0.0   ;;  %v1195_v22 = vld [vmem:[#allocation8 + $0x8] sm:$0xff]  }
  0x4c   :  { %v1192_v16 = vld [vmem:[#allocation6 + $0x138] sm:$0xff]   ;;  %62 = vst [vmem:[#allocation2] sm:$0x3] %v1302_v21  ;;  %v1196_v23 = vld [vmem:[#allocation8 + $0x10] sm:$0xff]  }
  0x4d   :  { %1014 = vmatpush3.bf16.msra.mxu0 %v1151_v25  ;;  %v1193_v17 = vld [vmem:[#allocation6 + $0x1b8] sm:$0xff]   ;;  %v1198_v25 = vld [vmem:[#allocation8 + $0x20] sm:$0xff]  }
  0x4e   :  { %1036 = vmatpush3.bf16.msra.mxu1 %v1152_v26  ;;  %1015 = vmatprep.subr.bf16.mxu0 %v1153_v27  ;;  %v1197_v24 = vld [vmem:[#allocation8 + $0x18] sm:$0xff]   ;;  %v1199_v26 = vld [vmem:[#allocation8 + $0x28] sm:$0xff]   ;;  %v1200_v27 = vld [vmem:[#allocation8 + $0x30] sm:$0xff]  }
  0x4f   :  { %1037 = vmatprep.subr.bf16.mxu1 %v1154_v28  ;;  %v1201_v28 = vld [vmem:[#allocation8 + $0x38] sm:$0xff]  }
  0x51   :  { %1016 = vmatpush3.bf16.msra.mxu0 %v1155_v31 }
  0x52   :  { %1038 = vmatpush3.bf16.msra.mxu1 %v1156_v32  ;;  %1017 = vmatprep.subr.bf16.mxu0 %v1157_v33 }
  0x53   :  { %1039 = vmatprep.subr.bf16.mxu1 %v1158_v34 }
  0x55   :  { %1018 = vmatpush3.bf16.msra.mxu0 %v1159_v36 }
  0x56   :  { %1040 = vmatpush3.bf16.msra.mxu1 %v1160_v37  ;;  %1047 = vmatprep.subr.bf16.mxu0 %v1162_v41 }
  0x57   :  { %1069 = vmatprep.subr.bf16.mxu1 %v1163_v42 }
  0x58   :  { %668 = vmatmul.mubr.bf16.vlgmr.msra.gmra.mrb[0].mxu0 %v217_v44 }
  0x59   :  { %1048 = vmatpush3.bf16.msra.mxu0 %v1164_v46  ;;  %708 = vmatmul.mubr.bf16.vlgmr.msra.gmra.mrb[0].mxu1 %v239_v50  ;;  %v63_v50 = vld [vmem:[#allocation2] sm:$0x3] }
  0x5a   :  { %1049 = vmatprep.subr.bf16.mxu0 %v1166_v51  ;;  %1070 = vmatpush3.bf16.msra.mxu1 %v1165_v48 }
  0x5b   :  { %747 = vmatprep.mubr.bf16.mxu0 %v238_v54  ;;  %1071 = vmatprep.subr.bf16.mxu1 %v1167_v53 }
  0x5c   :  { %787 = vmatprep.mubr.bf16.mxu1 %v242_v57 }
  0x5d   :  { %1050 = vmatpush3.bf16.msra.mxu0 %v1168_v55 }
  0x5e   :  { %1051 = vmatprep.subr.bf16.mxu0 %v1170_v58  ;;  %1072 = vmatpush3.bf16.msra.mxu1 %v1169_v56  ;;  %v994_v56 = vld [vmem:[%s1403_s3] ss:$0 sm:$0xff] }
  0x5f   :  { %1073 = vmatprep.subr.bf16.mxu1 %v1171_v59 }
  0x61   :  { %1052 = vmatpush3.bf16.msra.mxu0 %v1172_v60 }
  0x62   :  { %1053 = vmatprep.subr.bf16.mxu0 %v1174_v62  ;;  %1074 = vmatpush3.bf16.msra.mxu1 %v1173_v61 }
  0x63   :  { %1075 = vmatprep.subr.bf16.mxu1 %v1175_v63 }
  0x65   :  { %1054 = vmatpush3.bf16.msra.mxu0 %v1176_v0 }
  0x66   :  { %1055 = vmatprep.subr.bf16.mxu0 %v1178_v2  ;;  %1076 = vmatpush3.bf16.msra.mxu1 %v1177_v1 }
  0x67   :  { %1077 = vmatprep.subr.bf16.mxu1 %v1179_v3 }
  0x69   :  { %1056 = vmatpush3.bf16.msra.mxu0 %v1180_v4 }
  0x6a   :  { %1057 = vmatprep.subr.bf16.mxu0 %v1182_v6  ;;  %1078 = vmatpush3.bf16.msra.mxu1 %v1181_v5 }
  0x6b   :  { %1079 = vmatprep.subr.bf16.mxu1 %v1183_v7 }
  0x6d   :  { %1058 = vmatpush3.bf16.msra.mxu0 %v1184_v8 }
  0x6e   :  { %1059 = vmatprep.subr.bf16.mxu0 %v1186_v10  ;;  %1080 = vmatpush3.bf16.msra.mxu1 %v1185_v9 }
  0x6f   :  { %1081 = vmatprep.subr.bf16.mxu1 %v1187_v11 }
  0x71   :  { %1060 = vmatpush3.bf16.msra.mxu0 %v1188_v12 }
  0x72   :  { %1061 = vmatprep.subr.bf16.mxu0 %v1190_v14  ;;  %1082 = vmatpush3.bf16.msra.mxu1 %v1189_v13 }
  0x73   :  { %1083 = vmatprep.subr.bf16.mxu1 %v1191_v15 }
  0x75   :  { %1062 = vmatpush3.bf16.msra.mxu0 %v1192_v16 }
  0x76   :  { %1084 = vmatpush3.bf16.msra.mxu1 %v1193_v17  ;;  %1100 = vmatprep.subr.bf16.mxu0 %v1302_v21 }
  0x78   :  { %748 = vmatmul.mubr.bf16.vlgmr.msra.gmra.mrb[4].mxu0 %v224_v18 }
  0x79   :  { %788 = vmatmul.mubr.bf16.vlgmr.msra.gmra.mrb[4].mxu1 %v240_v19  ;;  %1101 = vmatpush3.bf16.msra.mxu0 %v1194_v20 }
  0x7a   :  { %1102 = vmatprep.subr.bf16.mxu0 %v1302_v21  ;;  %1116 = vmatprep.mubr.msk.bf16.mxu0 %vm1303_vm0, %v1302_v21 }
  0x7d   :  { %1103 = vmatpush3.bf16.msra.mxu0 %v1195_v22 }
  0x7e   :  { %1104 = vmatprep.subr.bf16.mxu0 %v1302_v21 }
  0x81   :  { %1105 = vmatpush3.bf16.msra.mxu0 %v1196_v23 }
  0x82   :  { %1106 = vmatprep.subr.bf16.mxu0 %v1302_v21 }
  0x85   :  { %1107 = vmatpush3.bf16.msra.mxu0 %v1197_v24 }
  0x86   :  { %1108 = vmatprep.subr.bf16.mxu0 %v1302_v21 }
  0x89   :  { %1109 = vmatpush3.bf16.msra.mxu0 %v1198_v25 }
  0x8a   :  { %1110 = vmatprep.subr.bf16.mxu0 %v1302_v21 }
  0x8d   :  { %1111 = vmatpush3.bf16.msra.mxu0 %v1199_v26 }
  0x8e   :  { %1112 = vmatprep.subr.bf16.mxu0 %v1302_v21 }
  0x91   :  { %1113 = vmatpush3.bf16.msra.mxu0 %v1200_v27 }
  0x92   :  { %1114 = vmatprep.subr.bf16.mxu0 %v1302_v21 }
  0x95   :  { %1115 = vmatpush3.bf16.msra.mxu0 %v1201_v28 }
 0x12b   :  { %v1019_v29 = vpop.f32.mrb[0].mxu0 }
 0x12c   :  { %v1020_v30 = vpop.f32.mrb[1].mxu0  ;;  %v1041_v31 = vpop.f32.mrb[0].mxu1 }
 0x12d   :  { %v1021_v32 = vadd.f32 %v1020_v30, %v1019_v29  ;;  %v1022_v33 = vpop.f32.mrb[2].mxu0  ;;  %v1042_v34 = vpop.f32.mrb[1].mxu1 }
 0x12e   :  { %v1023_v35 = vpop.f32.mrb[3].mxu0  ;;  %v1043_v36 = vadd.f32 %v1042_v34, %v1041_v31  ;;  %v1044_v37 = vpop.f32.mrb[2].mxu1 }
 0x12f   :  { %v1045_v38 = vpop.f32.mrb[3].mxu1 }
 0x130   :  { %v710_v39 = vadd.f32 %v1043_v36, %v1021_v32 }
 0x14b   :  { %v1063_v40 = vpop.f32.mrb[4].mxu0 }
 0x14c   :  { %v1064_v41 = vpop.f32.mrb[5].mxu0  ;;  %v1085_v42 = vpop.f32.mrb[4].mxu1 }
 0x14d   :  { %v1065_v43 = vadd.f32 %v1064_v41, %v1063_v40  ;;  %v1066_v44 = vpop.f32.mrb[6].mxu0  ;;  %v1086_v45 = vpop.f32.mrb[5].mxu1 }
 0x14e   :  { %v1067_v46 = vpop.f32.mrb[7].mxu0  ;;  %v1087_v48 = vadd.f32 %v1086_v45, %v1085_v42  ;;  %v1088_v49 = vpop.f32.mrb[6].mxu1 }
 0x14f   :  { %v750_v47 = vadd.f32 %v1065_v43, %v710_v39  ;;  %v1089_v51 = vpop.f32.mrb[7].mxu1 }
 0x151   :  { %v790_v52 = vadd.f32 %v1087_v48, %v750_v47 }
 0x153   :  { %v795_v53 = vadd.f32 %v790_v52, %v63_v50 }
 0x155   :  { %796 = vst [vmem:[#allocation2] sm:$0x3] %v795_v53 }
 0x15c   :  { %v800_v54 = vld [vmem:[#allocation2] sm:$0x3] }
 0x15d   :  { %v801_v55 = vpack.c.bf16 %v800_v54, %v800_v54 }
 0x15f   :  { %1117 = vmatmul.mubr.bf16.vlgmr.msra.gmra.mrb[8].mxu0 %v801_v55 }
 0x232   :  { %v907_v57 = vpop.f32.mrb[8].mxu0 }
 0x233   :  { %v908_v58 = vadd.f32 %v994_v56, %v907_v57  ;;  %v1118_v59 = vpop.f32.mrb[9].mxu0 }
 0x234   :  { %v910_v60 = vpop.f32.mrb[10].mxu0 }
 0x235   :  { %913 = vst [vmem:[#allocation9] sm:$0x3] %v908_v58  ;;  %v1119_v61 = vpop.f32.mrb[11].mxu0 }
 0x236   :  { %1279 = shalt.err (!%p1276_p0)
}
 0x237   :  { %s1280_s3 = scalar_lea.hbm %s1404_s4, 32 }
 0x238   :  { %p1281_p1 = scmp.ne.s32.totalorder %s1404_s4, %s1280_s3  ;;  %p1284_p2 = scmp.lt.u32.totalorder %s1280_s3, %s1404_s4 }
 0x23a   :  { %p1286_p3 = pnand %p1284_p2, %p1281_p1 }
 0x23c   :  { %1289 = shalt.err (!%p1286_p3)
}
 0x23d   :  { %923 = dma.vmem_to_hbm [thread:$0]  %s921_s27, 32, %s1404_s4, [#allocation5]  }
 0x23e   :  { %1294 = dma.done.wait [#allocation5], 32  }
 0x23f   :  { %1295 = vsyncadd [#allocation5], 4294967264 }
 0x240   :  { %927 = vsyncpa [#allocation4], 1 }
 0x241   :  { %928 = vsyncpa [#allocation7], 1 }
 0x242   :  { %929 = vsyncpa [#allocation5], 1 }

</bundles_post_ra>
